<compile_context>
chip_gen: v5e
topology: v5e:2x2
jax: 0.10.0
libtpu: 0.0.40
codegen_flags: <defaults>
</compile_context>

<pallas_src>
import math

import jax
import jax.numpy as jnp
from jax.experimental import pallas as pl
from jax.experimental.pallas import tpu as pltpu


def _temporal_attn_kernel(x_ref, wqkv_ref, mask_ref, o_ref):
    """x_ref: (W, TN, Din); wqkv_ref: (Din, 3*Dout); mask_ref: (W, W); o_ref: (W, TN, Dout)."""
    W, TN, Din = x_ref.shape
    Dout = o_ref.shape[-1]

    x = x_ref[...]          # native dtype — bf16 inputs hit the MXU at full rate
    wqkv = wqkv_ref[...]

    # Fused Q/K/V projection as ONE big MXU matmul: (W*TN, Din) @ (Din, 3*Dout).
    # TN is a multiple of 8, so merging the leading dims is a free re-tiling.
    qkv = jnp.dot(x.reshape(W * TN, Din), wqkv,
                  preferred_element_type=jnp.float32)          # f32 accumulation
    qkv = qkv.reshape(W, TN, 3 * Dout)

    # Window-major -> node-major on-chip (XLU); HBM stays window-major.
    qkv_nm = pltpu.einshape("wnd->nwd", qkv)                   # (TN, W, 3*Dout)

    cdt = x.dtype
    q = qkv_nm[..., :Dout].astype(cdt)
    k = qkv_nm[..., Dout:2 * Dout].astype(cdt)
    v = qkv_nm[..., 2 * Dout:].astype(cdt)

    # Scores: the 1/sqrt(num_windows) scale is already folded into the Q weights.
    scores = jnp.einsum("nwe,nue->nwu", q, k,
                        preferred_element_type=jnp.float32)    # (TN, W, W)
    scores = scores + mask_ref[...].astype(jnp.float32)[None, :, :]

    # Softmax over the key/window axis, in f32 (== nn.Softmax(dim=2)).
    m = jnp.max(scores, axis=-1, keepdims=True)
    p = jnp.exp(scores - m)
    denom = jnp.sum(p, axis=-1, keepdims=True)
    weight = p * pl.reciprocal(denom, approx=True)             # EUP slot, ~free

    out_nm = jnp.einsum("nwu,nue->nwe", weight.astype(cdt), v,
                        preferred_element_type=jnp.float32)    # (TN, W, Dout)
    out_wm = pltpu.einshape("nwe->wne", out_nm)                # back to window-major
    o_ref[...] = out_wm.astype(o_ref.dtype)


def _choose_node_tile(num_nodes, num_windows, in_dim, out_dim, itemsize,
                      vmem_budget_bytes=8 * 1024 * 1024):
    """Largest multiple-of-8 divisor of num_nodes whose per-tile working set fits
    the VMEM budget, preferring >=4 (then >=2) grid tiles (v7x megacore +
    pipelining). Budget is conservative so it also fits v7x's smaller VMEM."""
    cands = [d for d in range(8, num_nodes + 1, 8) if num_nodes % d == 0]
    if not cands:
        raise ValueError("num_nodes must have a divisor that is a multiple of 8")

    def working_set(d):
        io = 2 * (num_windows * d * in_dim + num_windows * d * out_dim) * itemsize  # double-buffered I/O
        proj = 2 * num_windows * d * 3 * out_dim * 4          # qkv (window- & node-major), f32
        attn = (2 * d * num_windows * num_windows + 2 * d * num_windows * out_dim) * 4
        return io + proj + attn

    fitting = [d for d in cands if working_set(d) <= vmem_budget_bytes] or [min(cands)]
    for min_tiles in (4, 2):
        ok = [d for d in fitting if num_nodes // d >= min_tiles]
        if ok:
            return max(ok)
    return max(fitting)


def temporal_self_attention(all_time_embeddings, wq, wk, wv, time_mask, *, node_tile=None):
    """Forward pass of TemporalSelfAttentionLayer.

    all_time_embeddings: [num_windows, num_nodes, in_dim] (PyTorch layout).
    Returns [num_windows, num_nodes, out_dim].
    """
    W, N, Din = all_time_embeddings.shape
    Dout = wq.shape[1]

    # Fold 1/sqrt(num_windows) into Wq (one tiny XLA op, hoisted out of the
    # kernel) and fuse the three projection weights into [Din, 3*Dout].
    scale = 1.0 / (W ** 0.5)
    wqkv = jnp.concatenate([(wq * scale).astype(wq.dtype), wk, wv], axis=1)

    if node_tile is None:
        node_tile = _choose_node_tile(N, W, Din, Dout, all_time_embeddings.dtype.itemsize)
    if N % node_tile != 0 or node_tile % 8 != 0:
        raise ValueError("node_tile must divide num_nodes and be a multiple of 8")

    grid = (N // node_tile,)
    return pl.pallas_call(
        _temporal_attn_kernel,
        out_shape=jax.ShapeDtypeStruct((W, N, Dout), all_time_embeddings.dtype),
        grid_spec=pltpu.PrefetchScalarGridSpec(
            num_scalar_prefetch=0,
            grid=grid,
            in_specs=[
                pl.BlockSpec((W, node_tile, Din), lambda i: (0, i, 0)),   # x, window-major
                pl.BlockSpec((Din, 3 * Dout), lambda i: (0, 0)),          # fused Wqkv
                pl.BlockSpec((W, W), lambda i: (0, 0)),                   # causal time mask
            ],
            out_specs=pl.BlockSpec((W, node_tile, Dout), lambda i: (0, i, 0)),
        ),
        compiler_params=pltpu.CompilerParams(
            dimension_semantics=("parallel",),
            vmem_limit_bytes=32 * 1024 * 1024,
        ),
    )(all_time_embeddings, wqkv, time_mask)


def _xavier_normal(key, shape, gain):
    fan_in, fan_out = shape
    std = gain * math.sqrt(2.0 / (fan_in + fan_out))
    return std * jax.random.normal(key, shape, dtype=jnp.float32)


def _make_time_mask(num_windows):
    # 0 for j <= i (causal / lower-triangular incl. diag), -1e10 otherwise.
    i = jnp.arange(num_windows)[:, None]
    j = jnp.arange(num_windows)[None, :]
    return jnp.where(j <= i, 0.0, -1e10).astype(jnp.float32)


def _reference_jax(x, wq, wk, wv, mask):
    # Pure-JAX reference mirroring the PyTorch forward, for sanity checking.
    hp = jax.lax.Precision.HIGHEST
    xe = jnp.transpose(x, (1, 0, 2))                            # [N, W, Din]
    q = jnp.einsum("nwd,de->nwe", xe, wq, precision=hp)
    k = jnp.einsum("nwd,de->nwe", xe, wk, precision=hp)
    v = jnp.einsum("nwd,de->nwe", xe, wv, precision=hp)
    W = x.shape[0]
    qk = jnp.einsum("nwe,nue->nwu", q, k, precision=hp) / (W ** 0.5) + mask[None]
    w = jax.nn.softmax(qk, axis=2)
    att = jnp.einsum("nwu,nue->nwe", w, v, precision=hp)
    return jnp.transpose(att, (1, 0, 2))                        # [W, N, Dout]


if __name__ == "__main__":
    # Small shapes consistent with the module.
    num_windows = 8
    num_nodes = 64
    in_dim = 16
    out_dim = 32

    key = jax.random.PRNGKey(0)
    k_x, k_q, k_k, k_v = jax.random.split(key, 4)

    # Input: [num_windows, num_nodes, in_dim] (PyTorch forward's expected layout).
    x = jax.random.normal(k_x, (num_windows, num_nodes, in_dim), dtype=jnp.float32)

    gain = math.sqrt(2.0)  # nn.init.calculate_gain('relu')
    wq = _xavier_normal(k_q, (in_dim, out_dim), gain)
    wk = _xavier_normal(k_k, (in_dim, out_dim), gain)
    wv = _xavier_normal(k_v, (in_dim, out_dim), gain)
    mask = _make_time_mask(num_windows)

    attn = jax.jit(temporal_self_attention)
    out = jax.block_until_ready(attn(x, wq, wk, wv, mask))

    ref = _reference_jax(x, wq, wk, wv, mask)
    assert out.shape == (num_windows, num_nodes, out_dim)
    max_err = float(jnp.max(jnp.abs(out - ref)))
    assert jnp.allclose(out, ref, atol=5e-3, rtol=5e-3), (
        f"mismatch vs reference (max abs err {max_err:.3e})")

    print("KERNEL_OK")
</pallas_src>

<mosaic_0001>
module attributes {stable_mosaic.version = 11 : i64} {
  func.func @_temporal_attn_kernel(%arg0: i32, %arg1: memref<8x16x16xf32, #tpu.memory_space<vmem>>, %arg2: memref<16x96xf32, #tpu.memory_space<vmem>>, %arg3: memref<8x8xf32, #tpu.memory_space<vmem>>, %arg4: memref<8x16x32xf32, #tpu.memory_space<vmem>>) attributes {dimension_semantics = [#tpu.dimension_semantics<parallel>], iteration_bounds = array<i64: 4>, scalar_prefetch = 0 : i64, scratch_operands = 0 : i64, tpu.core_type = #tpu.core_type<tc>, window_params = [{transform_indices = @transform_0, window_bounds = array<i64: 8, 16, 16>}, {pipeline_mode = #tpu.pipeline_mode<synchronous>, transform_indices = @transform_1, window_bounds = array<i64: 16, 96>}, {pipeline_mode = #tpu.pipeline_mode<synchronous>, transform_indices = @transform_2, window_bounds = array<i64: 8, 8>}, {transform_indices = @transform_3, window_bounds = array<i64: 8, 16, 32>}]} {
    %c0 = arith.constant 0 : index
    %c0_0 = arith.constant 0 : index
    %c0_1 = arith.constant 0 : index
    %0 = vector.load %arg1[%c0, %c0_0, %c0_1] : memref<8x16x16xf32, #tpu.memory_space<vmem>>, vector<8x16x16xf32>
    %c0_2 = arith.constant 0 : index
    %c0_3 = arith.constant 0 : index
    %1 = vector.load %arg2[%c0_2, %c0_3] : memref<16x96xf32, #tpu.memory_space<vmem>>, vector<16x96xf32>
    %2 = vector.shape_cast %0 : vector<8x16x16xf32> to vector<128x16xf32>
    %cst = arith.constant dense<0.000000e+00> : vector<128x96xf32>
    %3 = tpu.matmul %2, %1, %cst {dimension_numbers = #tpu.dot_dimension_numbers<[1], [0], [0], [1], [0, 0, 1, 1], [], []>} : vector<128x16xf32>, vector<16x96xf32>, vector<128x96xf32> -> vector<128x96xf32>
    %4 = vector.shape_cast %3 : vector<128x96xf32> to vector<8x16x96xf32>
    %5 = tpu.transpose %4, [1, 0, 2] : vector<8x16x96xf32> -> vector<16x8x96xf32>
    %6 = vector.extract_strided_slice %5 {offsets = [0, 0, 0], sizes = [16, 8, 32], strides = [1, 1, 1]} : vector<16x8x96xf32> to vector<16x8x32xf32>
    %7 = vector.extract_strided_slice %5 {offsets = [0, 0, 32], sizes = [16, 8, 32], strides = [1, 1, 1]} : vector<16x8x96xf32> to vector<16x8x32xf32>
    %8 = vector.extract_strided_slice %5 {offsets = [0, 0, 64], sizes = [16, 8, 32], strides = [1, 1, 1]} : vector<16x8x96xf32> to vector<16x8x32xf32>
    "tpu.trace_start"() <{level = 10 : i32, message = "nwe,nue->nwu"}> : () -> ()
    %cst_4 = arith.constant dense<0.000000e+00> : vector<16x8x8xf32>
    %9 = tpu.matmul %6, %7, %cst_4 {dimension_numbers = #tpu.dot_dimension_numbers<[2], [2], [1], [1], [0, 0, 0, 1, 1, 1], [0], [0]>} : vector<16x8x32xf32>, vector<16x8x32xf32>, vector<16x8x8xf32> -> vector<16x8x8xf32>
    "tpu.trace_stop"() : () -> ()
    %c0_5 = arith.constant 0 : index
    %c0_6 = arith.constant 0 : index
    %10 = vector.load %arg3[%c0_5, %c0_6] : memref<8x8xf32, #tpu.memory_space<vmem>>, vector<8x8xf32>
    %11 = vector.shape_cast %10 : vector<8x8xf32> to vector<1x8x8xf32>
    %12 = vector.broadcast %11 : vector<1x8x8xf32> to vector<16x8x8xf32>
    %13 = arith.addf %9, %12 : vector<16x8x8xf32>
    %cst_7 = arith.constant dense<0xFF800000> : vector<16x8xf32>
    %14 = vector.multi_reduction <maximumf>, %13, %cst_7 [2] : vector<16x8x8xf32> to vector<16x8xf32>
    %15 = vector.shape_cast %14 : vector<16x8xf32> to vector<16x8x1xf32>
    %16 = vector.broadcast %15 : vector<16x8x1xf32> to vector<16x8x8xf32>
    %17 = arith.subf %13, %16 : vector<16x8x8xf32>
    %18 = math.exp %17 : vector<16x8x8xf32>
    %cst_8 = arith.constant dense<0.000000e+00> : vector<16x8xf32>
    %19 = vector.multi_reduction <add>, %18, %cst_8 [2] : vector<16x8x8xf32> to vector<16x8xf32>
    %20 = vector.shape_cast %19 : vector<16x8xf32> to vector<16x8x1xf32>
    %21 = tpu.reciprocal %20 {approx = true} : vector<16x8x1xf32> -> vector<16x8x1xf32>
    %22 = vector.broadcast %21 : vector<16x8x1xf32> to vector<16x8x8xf32>
    %23 = arith.mulf %18, %22 : vector<16x8x8xf32>
    "tpu.trace_start"() <{level = 10 : i32, message = "nwu,nue->nwe"}> : () -> ()
    %cst_9 = arith.constant dense<0.000000e+00> : vector<16x8x32xf32>
    %24 = tpu.matmul %23, %8, %cst_9 {dimension_numbers = #tpu.dot_dimension_numbers<[2], [1], [1], [2], [0, 0, 0, 1, 1, 2], [0], [0]>} : vector<16x8x8xf32>, vector<16x8x32xf32>, vector<16x8x32xf32> -> vector<16x8x32xf32>
    "tpu.trace_stop"() : () -> ()
    %25 = tpu.transpose %24, [1, 0, 2] : vector<16x8x32xf32> -> vector<8x16x32xf32>
    %c0_10 = arith.constant 0 : index
    %c0_11 = arith.constant 0 : index
    %c0_12 = arith.constant 0 : index
    %26 = vector.load %arg4[%c0_10, %c0_11, %c0_12] : memref<8x16x32xf32, #tpu.memory_space<vmem>>, vector<8x16x32xf32>
    tpu.vector_store %arg4[%c0_10, %c0_11, %c0_12], %25 {strides = array<i32>} : memref<8x16x32xf32, #tpu.memory_space<vmem>>, vector<8x16x32xf32>,
    return
  }
  func.func @transform_0(%arg0: i32) -> (i32, i32, i32) {
    %c0_i32 = arith.constant 0 : i32
    %c0_i32_0 = arith.constant 0 : i32
    %c0_i32_1 = arith.constant 0 : i32
    return %c0_i32, %arg0, %c0_i32_0 : i32, i32, i32
  }
  func.func @transform_1(%arg0: i32) -> (i32, i32) {
    %c0_i32 = arith.constant 0 : i32
    %c0_i32_0 = arith.constant 0 : i32
    %c0_i32_1 = arith.constant 0 : i32
    return %c0_i32, %c0_i32_0 : i32, i32
  }
  func.func @transform_2(%arg0: i32) -> (i32, i32) {
    %c0_i32 = arith.constant 0 : i32
    %c0_i32_0 = arith.constant 0 : i32
    %c0_i32_1 = arith.constant 0 : i32
    return %c0_i32, %c0_i32_0 : i32, i32
  }
  func.func @transform_3(%arg0: i32) -> (i32, i32, i32) {
    %c0_i32 = arith.constant 0 : i32
    %c0_i32_0 = arith.constant 0 : i32
    %c0_i32_1 = arith.constant 0 : i32
    return %c0_i32, %arg0, %c0_i32_0 : i32, i32, i32
  }
}

</mosaic_0001>

<bundles_post_ra>
// kernel: temporal_self_attention.1
= control target key start
LH: loop header
LB: loop body
LE: loop exit
PB: predicated region body
PF: predicated region fallthrough
CT: control target
= control target key end

     0   :  { %s2308_s12 = smov 0   ;;  %s2310_s13 = smov 0   ;;  %s3012_s0 = inlined_call_operand.vmem [shape: f32[8,64,16], index: 0, kind: input, shape index: {}]   ;;  %s3013_s1 = inlined_call_operand.vmem [shape: f32[16,96], index: 1, kind: input, shape index: {}]   ;;  %s3014_s2 = inlined_call_operand.vmem [shape: f32[8,8], index: 2, kind: input, shape index: {}]   ;;  %s3015_s3 = inlined_call_operand.vmem [shape: f32[8,64,32], index: 3, kind: output, shape index: {}]  }
   0x1   :  { %s2312_s14 = smov 0  }
   0x2 LB: > { %s2046_s15 = sadd.s32 4294967295, %s2282_s14   ;;  %s2325_s16 = sadd.s32 1, %s2282_s14   ;;  %s2282_s14 = sphi %s2312_s14, %s3019_s14   ;;  %s2278_s13 = sphi %s2310_s13, %s3018_s13   ;;  %s2274_s12 = sphi %s2308_s12, %s3017_s12  }
   0x3   : > { %s17_s17 = ssub.s32 %s2282_s14, %s2325_s16  ;;  %s20_s18 = sadd.s32 1, %s2278_s13 }
   0x4   : > { %p18_p0 = scmp.eq.s32.totalorder %s17_s17, 0  ;;  %p27_p1 = scmp.ne.s32.totalorder %s2278_s13, %s2274_s12 }
   0x5   : > { %p28_p2 = scmp.eq.s32.totalorder %s2282_s14, 0  ;;  %p99_p3 = scmp.eq.s32.totalorder %s2046_s15, 3 }
   0x6   : > { %s2336_s19 = scalar_select %p18_p0, %s2278_s13, %s20_s18  }
   0x7   : > { %p29_p4 = por %p28_p2, %p27_p1  ;;  %p2338_p5 = por %p99_p3, %p27_p1 }
   0x8   : > { %p2049_p6 = scmp.ge.s32.totalorder %s2282_s14, 4 }
   0xa   : > { %127 = sbr.rel (%p2049_p6) target bundleno = 35 (0x23), region = 24 }
   0xf   : > { %130 = sbr.rel (!%p29_p4) target bundleno = 35 (0x23), region = 28  ;;  %s132_s21 = sand.u32 (%p29_p4), 1, %s2278_s13  }
  0x10   : > { %s2125_s22 = sshll.u32 (%p29_p4), %s2282_s14, 4  ;;  %s2050_s23 = sshll.u32 (%p29_p4), %s132_s21, 7 }
  0x11   : > { %s2348_s26 = scalar_lea.vmem (%p29_p4), %s3012_s0, %s2125_s22  ;;  %s134_s27 = scalar_lea.vmem (%p29_p4), [#allocation2], %s2050_s23 }
  0x12   : > { %v196_v0 = vld [vmem:[%s2348_s26] sm:$0xff] (%p29_p4)  ;;  %v198_v1 = vld [vmem:[%s2348_s26 + $0x8] sm:$0xff] (%p29_p4) }
  0x13   : > { %v200_v2 = vld [vmem:[%s2348_s26 + $0x40] sm:$0xff] (%p29_p4)  ;;  %197 = vst [vmem:[%s134_s27] sm:$0xff] (%p29_p4), %v196_v0  ;;  %v202_v3 = vld [vmem:[%s2348_s26 + $0x48] sm:$0xff] (%p29_p4) }
  0x14   : > { %199 = vst [vmem:[%s134_s27 + $0x8] sm:$0xff] %v198_v1  ;;  %v204_v4 = vld [vmem:[%s2348_s26 + $0x80] sm:$0xff]  ;;  %v206_v5 = vld [vmem:[%s2348_s26 + $0x88] sm:$0xff] }
  0x15   : > { %201 = vst [vmem:[%s134_s27 + $0x10] sm:$0xff] %v200_v2  ;;  %v208_v6 = vld [vmem:[%s2348_s26 + $0xc0] sm:$0xff]  ;;  %v210_v7 = vld [vmem:[%s2348_s26 + $0xc8] sm:$0xff] }
  0x16   : > { %203 = vst [vmem:[%s134_s27 + $0x18] sm:$0xff] %v202_v3  ;;  %v212_v8 = vld [vmem:[%s2348_s26 + $0x100] sm:$0xff]  ;;  %v214_v9 = vld [vmem:[%s2348_s26 + $0x108] sm:$0xff] }
  0x17   : > { %205 = vst [vmem:[%s134_s27 + $0x20] sm:$0xff] %v204_v4  ;;  %v216_v10 = vld [vmem:[%s2348_s26 + $0x140] sm:$0xff]  ;;  %v218_v11 = vld [vmem:[%s2348_s26 + $0x148] sm:$0xff] }
  0x18   : > { %207 = vst [vmem:[%s134_s27 + $0x28] sm:$0xff] %v206_v5  ;;  %v220_v12 = vld [vmem:[%s2348_s26 + $0x180] sm:$0xff]  ;;  %v222_v13 = vld [vmem:[%s2348_s26 + $0x188] sm:$0xff] }
  0x19   : > { %209 = vst [vmem:[%s134_s27 + $0x30] sm:$0xff] %v208_v6  ;;  %v224_v14 = vld [vmem:[%s2348_s26 + $0x1c0] sm:$0xff]  ;;  %v226_v15 = vld [vmem:[%s2348_s26 + $0x1c8] sm:$0xff] }
  0x1a   : > { %211 = vst [vmem:[%s134_s27 + $0x38] sm:$0xff] %v210_v7 }
  0x1b   : > { %213 = vst [vmem:[%s134_s27 + $0x40] sm:$0xff] %v212_v8 }
  0x1c   : > { %215 = vst [vmem:[%s134_s27 + $0x48] sm:$0xff] %v214_v9 }
  0x1d   : > { %217 = vst [vmem:[%s134_s27 + $0x50] sm:$0xff] %v216_v10 }
  0x1e   : > { %219 = vst [vmem:[%s134_s27 + $0x58] sm:$0xff] %v218_v11 }
  0x1f   : > { %221 = vst [vmem:[%s134_s27 + $0x60] sm:$0xff] %v220_v12 }
  0x20   : > { %223 = vst [vmem:[%s134_s27 + $0x68] sm:$0xff] %v222_v13 }
  0x21   : > { %225 = vst [vmem:[%s134_s27 + $0x70] sm:$0xff] %v224_v14 }
  0x22   : > { %227 = vst [vmem:[%s134_s27 + $0x78] sm:$0xff] %v226_v15 }
  0x23 PF: > { %p2053_p7 = scmp.ge.s32.totalorder %s2282_s14, 1  ;;  %p232_p8 = scmp.lt.s32.totalorder %s2282_s14, 5 }
  0x25   : > { %p233_p9 = pnand %p2053_p7, %p232_p8 }
  0x26   : > { %s239_s5 = sand.u32 (!%p233_p9), 1, %s2274_s12   ;;  %s2286_s8 = smov (!%p233_p9), 96  }
  0x27   : > { %236 = sbr.rel (%p233_p9) target bundleno = 995 (0x3e3), region = 66  ;;  %s2375_s6 = sshll.u32 (!%p233_p9), %s239_s5, 7 }
  0x28   : > { %s2378_s7 = scalar_lea.vmem (!%p233_p9), [#allocation2], %s2375_s6  ;;  %s2287_s9 = smov (!%p233_p9), 64  }
  0x29   : > { %s2897_s12 = scalar_lea.vmem (!%p233_p9), [#allocation3], %s2375_s6 }
  0x2c   : > { %v280_v16 = vld [vmem:[%s3013_s1 + $0x8] sm:$0xff]  ;;  %v279_v17 = vld [vmem:[%s3013_s1] sm:$0xff]  ;;  %vm281_vm0 = vcmask 130048   ;;  %v265_v20 = vld [vmem:[%s2378_s7 + $0x10] sm:$0xff]  ;;  %v2284_v39 = vmov 1983009808  }
  0x2d   : > { %344 = vmatpush.msra.mxu0 %v280_v16  ;;  %2127 = vmatpush.msra.mxu1 %v280_v16  ;;  %v263_v18 = vld [vmem:[%s2378_s7] sm:$0xff]  ;;  %v264_v19 = vld [vmem:[%s2378_s7 + $0x8] sm:$0xff]  ;;  %v266_v21 = vld [vmem:[%s2378_s7 + $0x18] sm:$0xff]  ;;  %v401_v40 = vunpack.c.l.s4 %v2284_v39  ;;  %vm396_vm1 = vcmask 1047556   ;;  %vm624_vm2 = vcmask 261120   ;;  %vm1054_vm3 = vcmask 64512  }
  0x2e   : > { %2128 = vmatpush.msra.mxu2 %v280_v16  ;;  %2129 = vmatpush.msra.mxu3 %v280_v16  ;;  %v275_v22 = vld [vmem:[%s2378_s7 + $0x60] sm:$0xff]  ;;  %v276_v24 = vld [vmem:[%s2378_s7 + $0x68] sm:$0xff]  ;;  %v277_v26 = vld [vmem:[%s2378_s7 + $0x70] sm:$0xff]  ;;  %s2126_s17 = sshll.u32 (%p2338_p5), %s2046_s15, 4 }
  0x2f   : > { %345 = vmatpush.msra.mxu0 %v279_v17  ;;  %2130 = vmatpush.msra.mxu1 %v279_v17  ;;  %v267_v23 = vld [vmem:[%s2378_s7 + $0x20] sm:$0xff]  ;;  %v268_v25 = vld [vmem:[%s2378_s7 + $0x28] sm:$0xff]  ;;  %v269_v27 = vld [vmem:[%s2378_s7 + $0x30] sm:$0xff]  ;;  %v2413_v46 = vunpack.c.0.s8 %v401_v40  ;;  %s1896_s20 = scalar_lea.vmem (%p2338_p5), %s3015_s3, %s2126_s17 }
  0x30   : > { %2056 = vmatmul.msk.f32.vlgmr.msra.gmra.mxu0 %vm281_vm0, %v263_v18  ;;  %2131 = vmatpush.msra.mxu2 %v279_v17  ;;  %v278_v28 = vld [vmem:[%s2378_s7 + $0x78] sm:$0xff]  ;;  %v271_v30 = vld [vmem:[%s2378_s7 + $0x40] sm:$0xff]  ;;  %v272_v31 = vld [vmem:[%s2378_s7 + $0x48] sm:$0xff] }
  0x31   : > { %2132 = vmatpush.msra.mxu3 %v279_v17  ;;  %2068 = vmatmul.msk.f32.vlgmr.msra.gmra.mxu1 %vm281_vm0, %v275_v22  ;;  %v270_v29 = vld [vmem:[%s2378_s7 + $0x38] sm:$0xff]  ;;  %v273_v32 = vld [vmem:[%s2378_s7 + $0x50] sm:$0xff] }
  0x32   : > { %2069 = vmatmul.msk.f32.vlgmr.msra.gmra.mxu2 %vm281_vm0, %v276_v24  ;;  %2070 = vmatmul.msk.f32.vlgmr.msra.gmra.mxu3 %vm281_vm0, %v277_v26  ;;  %v274_v33 = vld [vmem:[%s2378_s7 + $0x58] sm:$0xff] }
  0x38   : > { %2057 = vmatmul.msk.f32.gmra.mxu0 %vm281_vm0, %v264_v19 }
  0x3a   : > { %2071 = vmatmul.msk.f32.gmra.mxu3 %vm281_vm0, %v278_v28 }
  0x40   : > { %2058 = vmatmul.msk.f32.gmra.mxu0 %vm281_vm0, %v265_v20 }
  0x48   : > { %2059 = vmatmul.msk.f32.gmra.mxu0 %vm281_vm0, %v266_v21 }
  0x50   : > { %2060 = vmatmul.msk.f32.gmra.mxu0 %vm281_vm0, %v267_v23 }
  0x58   : > { %2061 = vmatmul.msk.f32.gmra.mxu0 %vm281_vm0, %v268_v25 }
  0x60   : > { %2062 = vmatmul.msk.f32.gmra.mxu0 %vm281_vm0, %v269_v27 }
  0x68   : > { %2063 = vmatmul.msk.f32.gmra.mxu0 %vm281_vm0, %v270_v29 }
  0x70   : > { %2064 = vmatmul.msk.f32.gmra.mxu0 %vm281_vm0, %v271_v30  ;;  %v2285_v30 = vmov 1934713408  }
  0x78   : > { %2065 = vmatmul.msk.f32.gmra.mxu0 %vm281_vm0, %v272_v31  ;;  %v449_v31 = vunpack.c.l.s4 %v2285_v30 }
  0x7a   : > { %v2458_v40 = vunpack.c.0.s8 %v449_v31 }
  0x80   : > { %2066 = vmatmul.msk.f32.gmra.mxu0 %vm281_vm0, %v273_v32 }
  0x88   : > { %2067 = vmatmul.msk.f32.gmra.mxu0 %vm281_vm0, %v274_v33 }
  0xad   : > { %v347_v34 = vpop.f32.mrf.mxu0 }
  0xae   : > { %v398_v43 = vrot.slane %v347_v34, 4  ;;  %v383_v22 = vpop.f32.mrf.mxu1 }
  0xaf   : > { %v420_v23 = vrot.slane %v383_v22, 4 }
  0xb5   : > { %v350_v35 = vpop.f32.mrf.mxu0  ;;  %v389_v25 = vpop.f32.mrf.mxu3 }
  0xb6   : > { %v510_v41 = vrot.slane %v350_v35, 4  ;;  %v432_v27 = vrot.slane %v389_v25, 4 }
  0xbd   : > { %v353_v36 = vpop.f32.mrf.mxu0 }
  0xbe   : > { %v410_v50 = vrot.slane %v353_v36, 4 }
  0xc5   : > { %v356_v37 = vpop.f32.mrf.mxu0 }
  0xc6   : > { %v522_v4 = vrot.slane %v356_v37, 4 }
  0xcd   : > { %v359_v38 = vpop.f32.mrf.mxu0 }
  0xce   : > { %v395_v44 = vrot.slane %v359_v38, 4  ;;  %v399_v47 = vsel %vm396_vm1, %v359_v38, %v398_v43 }
  0xcf   : > { %v407_v49 = vperm.slane %v399_v47, %v2413_v46 }
  0xd0   : > { %v397_v48 = vsel %vm396_vm1, %v395_v44, %v347_v34  ;;  %v386_v44 = vpop.f32.mrf.mxu2 }
  0xd1   : > { %v403_v51 = vperm.slane %v397_v48, %v2413_v46  ;;  %v458_v56 = vrot.slane %v407_v49, 4 }
  0xd3   : > { %v446_v59 = vrot.slane %v403_v51, 4 }
  0xd5   : > { %v362_v42 = vpop.f32.mrf.mxu0 }
  0xd6   : > { %v511_v45 = vsel %vm396_vm1, %v362_v42, %v510_v41  ;;  %v508_v53 = vrot.slane %v362_v42, 4 }
  0xd7   : > { %v519_v0 = vperm.slane %v511_v45, %v2413_v46 }
  0xd8   : > { %v509_v63 = vsel %vm396_vm1, %v508_v53, %v350_v35 }
  0xd9   : > { %v515_v5 = vperm.slane %v509_v63, %v2413_v46  ;;  %v570_v10 = vrot.slane %v519_v0, 4 }
  0xdb   : > { %v558_v13 = vrot.slane %v515_v5, 4 }
  0xdd   : > { %v365_v52 = vpop.f32.mrf.mxu0 }
  0xde   : > { %v408_v54 = vrot.slane %v365_v52, 4  ;;  %v411_v55 = vsel %vm396_vm1, %v365_v52, %v410_v50 }
  0xdf   : > { %v419_v57 = vperm.slane %v411_v55, %v2413_v46 }
  0xe0   : > { %v409_v58 = vsel %vm396_vm1, %v408_v54, %v353_v36  ;;  %v532_v54 = vrot.slane %v386_v44, 4 }
  0xe1   : > { %v415_v60 = vperm.slane %v409_v58, %v2413_v46  ;;  %v456_v61 = vrot.slane %v419_v57, 4  ;;  %v2424_v62 = vsel %vm396_vm1, %v419_v57, %v458_v56 }
  0xe3   : > { %v444_v1 = vrot.slane %v415_v60, 4  ;;  %v447_v2 = vsel %vm396_vm1, %v415_v60, %v446_v59  ;;  %v2430_v3 = vsel %vm396_vm1, %v456_v61, %v407_v49 }
  0xe5   : > { %v368_v6 = vpop.f32.mrf.mxu0  ;;  %v445_v7 = vsel %vm396_vm1, %v444_v1, %v403_v51  ;;  %v455_v51 = vperm.slane %v447_v2, %v2458_v40  ;;  %v463_v1 = vperm.slane %v2430_v3, %v2458_v40 }
  0xe6   : > { %v520_v8 = vrot.slane %v368_v6, 4  ;;  %v523_v9 = vsel %vm396_vm1, %v368_v6, %v522_v4  ;;  %v451_v59 = vperm.slane %v445_v7, %v2458_v40 }
  0xe7   : > { %v531_v11 = vperm.slane %v523_v9, %v2413_v46 }
  0xe8   : > { %v521_v12 = vsel %vm396_vm1, %v520_v8, %v356_v37  ;;  %v392_v37 = vpop.f32.mrf.mxu3  ;;  %v498_v8 = vrot.slane %v455_v51, 4 }
  0xe9   : > { %v527_v14 = vperm.slane %v521_v12, %v2413_v46  ;;  %v568_v15 = vrot.slane %v531_v11, 4  ;;  %v2439_v16 = vsel %vm396_vm1, %v531_v11, %v570_v10  ;;  %v544_v45 = vrot.slane %v392_v37, 4 }
  0xea   : > { %v494_v12 = vrot.slane %v451_v59, 4 }
  0xeb   : > { %v556_v17 = vrot.slane %v527_v14, 4  ;;  %v2442_v18 = vsel %vm396_vm1, %v527_v14, %v558_v13  ;;  %v2445_v19 = vsel %vm396_vm1, %v568_v15, %v519_v0  ;;  %v467_v14 = vperm.slane %v2424_v62, %v2458_v40 }
  0xed   : > { %v371_v20 = vpop.f32.mrf.mxu0  ;;  %v2448_v21 = vsel %vm396_vm1, %v556_v17, %v515_v5 }
  0xee   : > { %v421_v26 = vsel %vm396_vm1, %v420_v23, %v371_v20  ;;  %v422_v29 = vrot.slane %v371_v20, 4 }
  0xef   : > { %v427_v28 = vperm.slane %v421_v26, %v2413_v46 }
  0xf0   : > { %v423_v38 = vsel %vm396_vm1, %v383_v22, %v422_v29  ;;  %v502_v22 = vrot.slane %v463_v1, 4 }
  0xf1   : > { %v470_v35 = vrot.slane %v427_v28, 4  ;;  %v431_v48 = vperm.slane %v423_v38, %v2413_v46 }
  0xf3   : > { %v482_v5 = vrot.slane %v431_v48, 4 }
  0xf5   : > { %v2450_v24 = vpop.f32.mrf.mxu0 }
  0xf6   : > { %v533_v4 = vsel %vm396_vm1, %v532_v54, %v2450_v24 }
  0xf7   : > { %v539_v9 = vperm.slane %v533_v4, %v2413_v46 }
  0xf9   : > { %v582_v20 = vrot.slane %v539_v9, 4 }
  0xfd   : > { %v377_v32 = vpop.f32.mrf.mxu0 }
  0xfe   : > { %v433_v33 = vsel %vm396_vm1, %v432_v27, %v377_v32  ;;  %v434_v34 = vrot.slane %v377_v32, 4 }
  0xff   : > { %v439_v36 = vperm.slane %v433_v33, %v2413_v46 }
 0x100   : > { %v435_v39 = vsel %vm396_vm1, %v389_v25, %v434_v34  ;;  %v534_v25 = vrot.slane %v2450_v24, 4 }
 0x101   : > { %v443_v41 = vperm.slane %v435_v39, %v2413_v46  ;;  %v468_v42 = vrot.slane %v439_v36, 4  ;;  %v471_v43 = vsel %vm396_vm1, %v439_v36, %v470_v35  ;;  %v563_v36 = vperm.slane %v2448_v21, %v2458_v40 }
 0x102   : > { %v479_v47 = vperm.slane %v471_v43, %v2458_v40  ;;  %v535_v24 = vsel %vm396_vm1, %v386_v44, %v534_v25 }
 0x103   : > { %v480_v49 = vrot.slane %v443_v41, 4  ;;  %v469_v50 = vsel %vm396_vm1, %v468_v42, %v427_v28  ;;  %v483_v10 = vsel %vm396_vm1, %v443_v41, %v482_v5  ;;  %v506_v28 = vrot.slane %v467_v14, 4 }
 0x104   : > { %v496_v52 = vrot.slane %v479_v47, 4  ;;  %v475_v53 = vperm.slane %v469_v50, %v2458_v40  ;;  %v2494_v3 = vsel %vm396_vm1, %v479_v47, %v498_v8  ;;  %v491_v15 = vperm.slane %v483_v10, %v2458_v40 }
 0x105   : > { %v380_v55 = vpop.f32.mrf.mxu0  ;;  %v481_v56 = vsel %vm396_vm1, %v480_v49, %v431_v48  ;;  %v567_v41 = vperm.slane %v2442_v18, %v2458_v40  ;;  %v575_v47 = vperm.slane %v2445_v19, %v2458_v40 }
 0x106   : > { %v545_v57 = vsel %vm396_vm1, %v544_v45, %v380_v55  ;;  %v2470_v58 = vsel %vm396_vm1, %v496_v52, %v455_v51  ;;  %v492_v60 = vrot.slane %v475_v53, 4  ;;  %v487_v61 = vperm.slane %v481_v56, %v2458_v40 }
 0x107   : > { %677 = vrot.lane.b32.xlu1 %v2470_v58, %s2286_s8  ;;  %v551_v63 = vperm.slane %v545_v57, %v2413_v46  ;;  %v546_v11 = vrot.slane %v380_v55, 4  ;;  %v2499_v13 = vsel %vm396_vm1, %v475_v53, %v494_v12  ;;  %v504_v29 = vrot.slane %v491_v15, 4 }
 0x108   : > { %v2478_v0 = vsel %vm396_vm1, %v492_v60, %v451_v59  ;;  %v500_v2 = vrot.slane %v487_v61, 4  ;;  %v2511_v27 = vsel %vm396_vm1, %v487_v61, %v502_v22  ;;  %v2518_v31 = vsel %vm396_vm1, %v491_v15, %v506_v28 }
 0x109   : > { %622 = vrot.lane.b32.xlu0 %v2478_v0, %s2286_s8  ;;  %v580_v7 = vrot.slane %v551_v63, 4  ;;  %v547_v23 = vsel %vm396_vm1, %v392_v37, %v546_v11  ;;  %v583_v26 = vsel %vm396_vm1, %v551_v63, %v582_v20  ;;  %v2525_v34 = vsel %vm396_vm1, %v504_v29, %v467_v14 }
 0x10a   : > { %v2487_v6 = vsel %vm396_vm1, %v500_v2, %v463_v1  ;;  %v555_v30 = vperm.slane %v547_v23, %v2413_v46  ;;  %v591_v32 = vperm.slane %v583_v26, %v2458_v40  ;;  %v543_v37 = vperm.slane %v535_v24, %v2413_v46 }
 0x10b   : > { %731 = vrot.lane.b32.xlu2 %v2487_v6, %s2286_s8  ;;  %v581_v17 = vsel %vm396_vm1, %v580_v7, %v539_v9  ;;  %v606_v45 = vrot.slane %v563_v36, 4  ;;  %v610_v49 = vrot.slane %v567_v41, 4  ;;  %v614_v52 = vrot.slane %v575_v47, 4 }
 0x10c   : > { %v587_v62 = vperm.slane %v581_v17, %v2458_v40  ;;  %v592_v35 = vrot.slane %v555_v30, 4  ;;  %v608_v38 = vrot.slane %v591_v32, 4  ;;  %v594_v43 = vrot.slane %v543_v37, 4 }
 0x10d   : > { %v2555_v50 = vsel %vm396_vm1, %v591_v32, %v610_v49  ;;  %v579_v56 = vperm.slane %v2439_v16, %v2458_v40  ;;  %v2161_v59 = vpack.i.bf16 %v2499_v13, %v2478_v0  ;;  %v2166_v63 = vpack.i.bf16 %v2470_v58, %v2494_v3 }
 0x10e   : > { %v604_v33 = vrot.slane %v587_v62, 4  ;;  %v593_v42 = vsel %vm396_vm1, %v592_v35, %v543_v37  ;;  %v2541_v44 = vsel %vm396_vm1, %v608_v38, %v567_v41  ;;  %v2546_v21 = vsel %vm396_vm1, %v587_v62, %v606_v45 }
 0x10f   : > { %704 = vrot.lane.b32.xlu1 %v2494_v3, %s2286_s8  ;;  %v599_v48 = vperm.slane %v593_v42, %v2458_v40  ;;  %v595_v18 = vsel %vm396_vm1, %v555_v30, %v594_v43  ;;  %v618_v60 = vrot.slane %v579_v56, 4  ;;  %v2171_v1 = vpack.i.bf16 %v2525_v34, %v2487_v6 }
 0x110   : > { %v2533_v39 = vsel %vm396_vm1, %v604_v33, %v563_v36  ;;  %v603_v51 = vperm.slane %v595_v18, %v2458_v40  ;;  %v2176_v2 = vpack.i.bf16 %v2518_v31, %v2511_v27 }
 0x111   : > { %650 = vrot.lane.b32.xlu0 %v2499_v13, %s2286_s8  ;;  %v612_v53 = vrot.slane %v599_v48, 4  ;;  %v2561_v19 = vsel %vm396_vm1, %v599_v48, %v614_v52  ;;  %v2181_v16 = vpack.i.bf16 %v2533_v39, %v2546_v21 }
 0x112   : > { %v616_v54 = vrot.slane %v603_v51, 4  ;;  %v2581_v61 = vsel %vm396_vm1, %v603_v51, %v618_v60 }
 0x113   : > { %758 = vrot.lane.b32.xlu2 %v2511_v27, %s2286_s8  ;;  %v2566_v55 = vsel %vm396_vm1, %v612_v53, %v575_v47 }
 0x114   : > { %v2573_v57 = vsel %vm396_vm1, %v616_v54, %v579_v56 }
 0x117   : > { %812 = vrot.lane.b32.xlu1 %v2518_v31, %s2286_s8 }
 0x119   : > { %785 = vrot.lane.b32.xlu0 %v2525_v34, %s2286_s8 }
 0x11b   : > { %839 = vrot.lane.b32.xlu2 %v2533_v39, %s2286_s8 }
 0x11f   : > { %893 = vrot.lane.b32.xlu1 %v2541_v44, %s2286_s8 }
 0x121   : > { %866 = vrot.lane.b32.xlu0 %v2546_v21, %s2286_s8 }
 0x123   : > { %920 = vrot.lane.b32.xlu2 %v2555_v50, %s2286_s8 }
 0x127   : > { %974 = vrot.lane.b32.xlu1 %v2561_v19, %s2286_s8 }
 0x129   : > { %947 = vrot.lane.b32.xlu0 %v2566_v55, %s2286_s8 }
 0x12b   : > { %1001 = vrot.lane.b32.xlu2 %v2573_v57, %s2286_s8 }
 0x12f   : > { %2162 = vrot.lane.b32.xlu1 %v2161_v59, %s2287_s9 }
 0x131   : > { %1028 = vrot.lane.b32.xlu0 %v2581_v61, %s2286_s8 }
 0x133   : > { %2182 = vrot.lane.b32.xlu2 %v2181_v16, %s2287_s9 }
 0x139   : > { %2167 = vrot.lane.b32.xlu0 %v2166_v63, %s2287_s9 }
 0x141   : > { %2172 = vrot.lane.b32.xlu0 %v2171_v1, %s2287_s9 }
 0x149   : > { %2177 = vrot.lane.b32.xlu0 %v2176_v2, %s2287_s9 }
 0x165   : > { %v732_v4 = vpop.permute.xlu2 %731 }
 0x16d   : > { %v759_v5 = vpop.permute.xlu2 %758 }
 0x175   : > { %v840_v7 = vpop.permute.xlu2 %839 }
 0x179   : > { %v678_v8 = vpop.permute.xlu1 %677 }
 0x17a   : > { %2076 = vmatpush.xpose.msk.msrb.mxu3 %vm624_vm2, %v678_v8 }
 0x17b   : > { %v623_v9 = vpop.permute.xlu0 %622 }
 0x17c   : > { %2072 = vmatpush.xpose.msk.msrb.mxu1 %vm624_vm2, %v623_v9 }
 0x17d   : > { %2077 = vmatmul.msk.f32.vlgmr.msrb.gmra.mxu3 %vm624_vm2, %v2470_v58  ;;  %v921_v11 = vpop.permute.xlu2 %920 }
 0x17e   : > { %2082 = vmatpush.xpose.msk.msra.mxu3 %vm624_vm2, %v759_v5 }
 0x17f   : > { %2073 = vmatmul.msk.f32.vlgmr.msrb.gmra.mxu1 %vm624_vm2, %v2478_v0 }
 0x181   : > { %v705_v10 = vpop.permute.xlu1 %704 }
 0x182   : > { %2088 = vmatpush.xpose.msk.msrb.mxu3 %vm624_vm2, %v840_v7  ;;  %2078 = vmatpush.xpose.msk.msra.mxu1 %vm624_vm2, %v705_v10 }
 0x183   : > { %v651_v12 = vpop.permute.xlu0 %650 }
 0x184   : > { %2074 = vmatpush.xpose.msk.msrb.mxu2 %vm624_vm2, %v651_v12 }
 0x185   : > { %2083 = vmatmul.msk.f32.vlgmr.msra.gmra.mxu3 %vm624_vm2, %v2511_v27  ;;  %v1002_v14 = vpop.permute.xlu2 %1001 }
 0x186   : > { %2094 = vmatpush.xpose.msk.msra.mxu3 %vm624_vm2, %v921_v11 }
 0x187   : > { %2075 = vmatmul.msk.f32.vlgmr.msrb.gmra.mxu2 %vm624_vm2, %v2499_v13  ;;  %2079 = vmatmul.msk.f32.vlgmr.msra.gmra.mxu1 %vm624_vm2, %v2494_v3 }
 0x188   : > { %2080 = vmatpush.xpose.msk.msra.mxu2 %vm624_vm2, %v732_v4 }
 0x189   : > { %v813_v58 = vpop.permute.xlu1 %812 }
 0x18b   : > { %v786_v0 = vpop.permute.xlu0 %785 }
 0x18c   : > { %2086 = vmatpush.xpose.msk.msrb.mxu2 %vm624_vm2, %v813_v58  ;;  %2084 = vmatpush.xpose.msk.msrb.mxu1 %vm624_vm2, %v786_v0 }
 0x18d   : > { %2089 = vmatmul.msk.f32.vlgmr.msrb.gmra.mxu3 %vm624_vm2, %v2533_v39 }
 0x18e   : > { %2100 = vmatpush.xpose.msk.msrb.mxu3 %vm624_vm2, %v1002_v14 }
 0x18f   : > { %2081 = vmatmul.msk.f32.vlgmr.msra.gmra.mxu2 %vm624_vm2, %v2487_v6  ;;  %2085 = vmatmul.msk.f32.vlgmr.msrb.gmra.mxu1 %vm624_vm2, %v2525_v34 }
 0x191   : > { %v894_v13 = vpop.permute.xlu1 %893 }
 0x192   : > { %2092 = vmatpush.xpose.msk.msra.mxu2 %vm624_vm2, %v894_v13 }
 0x193   : > { %v867_v3 = vpop.permute.xlu0 %866 }
 0x194   : > { %2090 = vmatpush.xpose.msk.msra.mxu1 %vm624_vm2, %v867_v3 }
 0x195   : > { %2095 = vmatmul.msk.f32.vlgmr.msra.gmra.mxu3 %vm624_vm2, %v2555_v50 }
 0x197   : > { %2087 = vmatmul.msk.f32.vlgmr.msrb.gmra.mxu2 %vm624_vm2, %v2518_v31  ;;  %2091 = vmatmul.msk.f32.vlgmr.msra.gmra.mxu1 %vm624_vm2, %v2546_v21  ;;  %v2654_v31 = vld [vmem:[%s3014_s2] sm:$0xff] }
 0x199   : > { %v975_v15 = vpop.permute.xlu1 %974 }
 0x19a   : > { %2098 = vmatpush.xpose.msk.msrb.mxu2 %vm624_vm2, %v975_v15 }
 0x19b   : > { %v948_v6 = vpop.permute.xlu0 %947 }
 0x19c   : > { %2096 = vmatpush.xpose.msk.msrb.mxu1 %vm624_vm2, %v948_v6 }
 0x19d   : > { %2101 = vmatmul.msk.f32.vlgmr.msrb.gmra.mxu3 %vm624_vm2, %v2573_v57 }
 0x19f   : > { %2093 = vmatmul.msk.f32.vlgmr.msra.gmra.mxu2 %vm624_vm2, %v2541_v44  ;;  %2097 = vmatmul.msk.f32.vlgmr.msrb.gmra.mxu1 %vm624_vm2, %v2566_v55 }
 0x1a1   : > { %v2163_v17 = vpop.permute.xlu1 %2162 }
 0x1a2   : > { %v2165_v20 = vunpack.i.h.bf16 %v2163_v17  ;;  %v2164_v22 = vunpack.i.l.bf16 %v2163_v17 }
 0x1a3   : > { %v1029_v23 = vpop.permute.xlu0 %1028 }
 0x1a4   : > { %2102 = vmatpush.xpose.msk.msra.mxu1 %vm624_vm2, %v1029_v23  ;;  %1252 = vmatpush.msra.mxu2 %v2164_v22 }
 0x1a5   : > { %1278 = vmatpush.msra.mxu3 %v2165_v20 }
 0x1a7   : > { %2099 = vmatmul.msk.f32.vlgmr.msrb.gmra.mxu2 %vm624_vm2, %v2561_v19  ;;  %2103 = vmatmul.msk.f32.vlgmr.msra.gmra.mxu1 %vm624_vm2, %v2581_v61 }
 0x1ab   : > { %v2168_v25 = vpop.permute.xlu0 %2167 }
 0x1ac   : > { %v2170_v26 = vunpack.i.h.bf16 %v2168_v25  ;;  %v2169_v27 = vunpack.i.l.bf16 %v2168_v25 }
 0x1ae   : > { %1304 = vmatpush.msrb.mxu1 %v2170_v26  ;;  %1330 = vmatpush.msrb.mxu2 %v2169_v27 }
 0x1b3   : > { %v2645_v62 = vpop.permute.xlu0 %2172 }
 0x1b4   : > { %v2174_v28 = vunpack.i.l.bf16 %v2645_v62 }
 0x1b6   : > { %1356 = vmatpush.msrb.mxu3 %v2174_v28  ;;  %v2737_v28 = vpop.permute.xlu2 %2182 }
 0x1bb   : > { %v2648_v29 = vpop.permute.xlu0 %2177 }
 0x1bc   : > { %v2179_v30 = vunpack.i.l.bf16 %v2648_v29 }
 0x1be   : > { %1382 = vmatpush.msra.mxu1 %v2179_v30 }
 0x1fc   : > { %v646_v32 = vpop.f32.mrf.mxu1 }
 0x1fd   : > { %v2657_v24 = vadd.f32 %v646_v32, %v2654_v31 }
 0x1ff   : > { %v1055_v33 = vsel %vm1054_vm3, %v2657_v24, -inf }
 0x200   : > { %v700_v34 = vpop.f32.mrf.mxu3  ;;  %1056 = vmax.xlane.f32.xlu1 %v1055_v33 }
 0x201   : > { %v2677_v48 = vadd.f32 %v700_v34, %v2654_v31 }
 0x203   : > { %v1061_v53 = vsel %vm1054_vm3, %v2677_v48, -inf }
 0x204   : > { %v727_v35 = vpop.f32.mrf.mxu1 }
 0x205   : > { %v2662_v36 = vadd.f32 %v727_v35, %v2654_v31 }
 0x207   : > { %v1064_v37 = vsel %vm1054_vm3, %v2662_v36, -inf }
 0x208   : > { %v781_v38 = vpop.f32.mrf.mxu3  ;;  %1065 = vmax.xlane.f32.xlu0 %v1064_v37 }
 0x209   : > { %v2667_v41 = vadd.f32 %v781_v38, %v2654_v31 }
 0x20a   : > { %v673_v39 = vpop.f32.mrf.mxu2 }
 0x20b   : > { %v2670_v42 = vadd.f32 %v673_v39, %v2654_v31  ;;  %v1070_v45 = vsel %vm1054_vm3, %v2667_v41, -inf }
 0x20c   : > { %v808_v21 = vpop.f32.mrf.mxu1 }
 0x20d   : > { %v1058_v43 = vsel %vm1054_vm3, %v2670_v42, -inf  ;;  %v2692_v59 = vadd.f32 %v808_v21, %v2654_v31 }
 0x20e   : > { %1059 = vmax.xlane.f32.xlu2 %v1058_v43 }
 0x20f   : > { %v1073_v4 = vsel %vm1054_vm3, %v2692_v59, -inf }
 0x210   : > { %1071 = vmax.xlane.f32.xlu0 %v1070_v45  ;;  %v862_v47 = vpop.f32.mrf.mxu3 }
 0x211   : > { %v2680_v49 = vadd.f32 %v862_v47, %v2654_v31 }
 0x212   : > { %v754_v18 = vpop.f32.mrf.mxu2 }
 0x213   : > { %v2683_v51 = vadd.f32 %v754_v18, %v2654_v31  ;;  %v1079_v54 = vsel %vm1054_vm3, %v2680_v49, -inf }
 0x214   : > { %v889_v60 = vpop.f32.mrf.mxu1 }
 0x215   : > { %v1067_v52 = vsel %vm1054_vm3, %v2683_v51, -inf  ;;  %v2707_v8 = vadd.f32 %v889_v60, %v2654_v31 }
 0x216   : > { %1068 = vmax.xlane.f32.xlu1 %v1067_v52  ;;  %1062 = vmax.xlane.f32.xlu2 %v1061_v53 }
 0x217   : > { %v1082_v0 = vsel %vm1054_vm3, %v2707_v8, -inf }
 0x218   : > { %1080 = vmax.xlane.f32.xlu0 %v1079_v54  ;;  %v943_v56 = vpop.f32.mrf.mxu3 }
 0x219   : > { %v2695_v63 = vadd.f32 %v943_v56, %v2654_v31 }
 0x21a   : > { %v835_v16 = vpop.f32.mrf.mxu2 }
 0x21b   : > { %v2698_v1 = vadd.f32 %v835_v16, %v2654_v31  ;;  %v1088_v5 = vsel %vm1054_vm3, %v2695_v63, -inf }
 0x21c   : > { %v970_v12 = vpop.f32.mrf.mxu1 }
 0x21d   : > { %v1076_v2 = vsel %vm1054_vm3, %v2698_v1, -inf  ;;  %v2722_v13 = vadd.f32 %v970_v12, %v2654_v31 }
 0x21e   : > { %1077 = vmax.xlane.f32.xlu1 %v1076_v2  ;;  %1074 = vmax.xlane.f32.xlu2 %v1073_v4 }
 0x21f   : > { %v1091_v17 = vsel %vm1054_vm3, %v2722_v13, -inf }
 0x220   : > { %1089 = vmax.xlane.f32.xlu0 %v1088_v5  ;;  %v1024_v7 = vpop.f32.mrf.mxu3 }
 0x221   : > { %v2710_v10 = vadd.f32 %v1024_v7, %v2654_v31 }
 0x222   : > { %v916_v9 = vpop.f32.mrf.mxu2 }
 0x223   : > { %v2713_v11 = vadd.f32 %v916_v9, %v2654_v31  ;;  %v1097_v14 = vsel %vm1054_vm3, %v2710_v10, -inf }
 0x224   : > { %v1051_v20 = vpop.f32.mrf.mxu1 }
 0x225   : > { %v1085_v58 = vsel %vm1054_vm3, %v2713_v11, -inf  ;;  %v2732_v22 = vadd.f32 %v1051_v20, %v2654_v31 }
 0x226   : > { %1086 = vmax.xlane.f32.xlu1 %v1085_v58  ;;  %1083 = vmax.xlane.f32.xlu2 %v1082_v0 }
 0x227   : > { %v1100_v23 = vsel %vm1054_vm3, %v2732_v22, -inf }
 0x228   : > { %1098 = vmax.xlane.f32.xlu0 %v1097_v14 }
 0x22a   : > { %v997_v3 = vpop.f32.mrf.mxu2 }
 0x22b   : > { %v2725_v15 = vadd.f32 %v997_v3, %v2654_v31 }
 0x22d   : > { %v1094_v6 = vsel %vm1054_vm3, %v2725_v15, -inf }
 0x22e   : > { %1095 = vmax.xlane.f32.xlu1 %v1094_v6  ;;  %1092 = vmax.xlane.f32.xlu2 %v1091_v17 }
 0x236   : > { %1101 = vmax.xlane.f32.xlu2 %v1100_v23 }
 0x273   : > { %v1057_v25 = vpop.xlane.xlu1 %1056 }
 0x274   : > { %v1103_v26 = vsub.f32 %v2657_v24, %v1057_v25 }
 0x276   : > { %v1119_v27 = vmul.f32 1.442695, %v1103_v26 }
 0x278   : > { %2196 = vpow2.f32 %v1119_v27 }
 0x27b   : > { %v1066_v30 = vpop.xlane.xlu0 %1065 }
 0x27c   : > { %v1106_v32 = vsub.f32 %v2662_v36, %v1066_v30 }
 0x27e   : > { %v2740_v33 = vpop.eup %2196  ;;  %v1125_v34 = vmul.f32 1.442695, %v1106_v32 }
 0x27f   : > { %v1151_v31 = vsel %vm1054_vm3, %v2740_v33, 0.0 }
 0x280   : > { %2198 = vpow2.f32 %v1125_v34  ;;  %1152 = vadd.xlane.f32.xlu1 %v1151_v31 }
 0x281   : > { %v1060_v35 = vpop.xlane.xlu2 %1059 }
 0x282   : > { %v1104_v37 = vsub.f32 %v2670_v42, %v1060_v35 }
 0x283   : > { %v1072_v38 = vpop.xlane.xlu0 %1071 }
 0x284   : > { %v1121_v24 = vmul.f32 1.442695, %v1104_v37  ;;  %v1108_v54 = vsub.f32 %v2667_v41, %v1072_v38 }
 0x286   : > { %v2745_v39 = vpop.eup %2198  ;;  %2200 = vpow2.f32 %v1121_v24  ;;  %v1129_v60 = vmul.f32 1.442695, %v1108_v54 }
 0x287   : > { %v1160_v43 = vsel %vm1054_vm3, %v2745_v39, 0.0 }
 0x288   : > { %1161 = vadd.xlane.f32.xlu0 %v1160_v43 }
 0x289   : > { %v1069_v36 = vpop.xlane.xlu1 %1068  ;;  %v1063_v45 = vpop.xlane.xlu2 %1062 }
 0x28a   : > { %v1107_v21 = vsub.f32 %v2683_v51, %v1069_v36  ;;  %v1105_v47 = vsub.f32 %v2677_v48, %v1063_v45 }
 0x28b   : > { %v1081_v18 = vpop.xlane.xlu0 %1080 }
 0x28c   : > { %v2751_v52 = vpop.eup %2200  ;;  %v1127_v53 = vmul.f32 1.442695, %v1107_v21  ;;  %v1123_v42 = vmul.f32 1.442695, %v1105_v47 }
 0x28d   : > { %v1154_v56 = vsel %vm1054_vm3, %v2751_v52, 0.0 }
 0x28e   : > { %2202 = vpow2.f32 %v1127_v53  ;;  %1155 = vadd.xlane.f32.xlu2 %v1154_v56 }
 0x28f   : > { %2204 = vpow2.f32 %v1123_v42 }
 0x290   : > { %2206 = vpow2.f32 %v1129_v60 }
 0x291   : > { %v1078_v16 = vpop.xlane.xlu1 %1077  ;;  %v1075_v2 = vpop.xlane.xlu2 %1074 }
 0x292   : > { %v1110_v51 = vsub.f32 %v2698_v1, %v1078_v16  ;;  %v1109_v41 = vsub.f32 %v2692_v59, %v1075_v2  ;;  %v1111_v59 = vsub.f32 %v2680_v49, %v1081_v18 }
 0x293   : > { %v1090_v4 = vpop.xlane.xlu0 %1089 }
 0x294   : > { %v2757_v48 = vpop.eup %2202  ;;  %v1133_v5 = vmul.f32 1.442695, %v1110_v51  ;;  %v1114_v7 = vsub.f32 %v2695_v63, %v1090_v4  ;;  %v1131_v0 = vmul.f32 1.442695, %v1109_v41  ;;  %v1135_v23 = vmul.f32 1.442695, %v1111_v59 }
 0x295   : > { %v2760_v9 = vpop.eup %2204  ;;  %v1163_v12 = vsel %vm1054_vm3, %v2757_v48, 0.0  ;;  %v2191_v41 = vpack.i.bf16 %v2561_v19, %v2555_v50 }
 0x296   : > { %2208 = vpow2.f32 %v1133_v5  ;;  %1164 = vadd.xlane.f32.xlu0 %v1163_v12  ;;  %v1157_v58 = vsel %vm1054_vm3, %v2760_v9, 0.0  ;;  %v1141_v1 = vmul.f32 1.442695, %v1114_v7  ;;  %v2767_v6 = vpop.eup %2206 }
 0x297   : > { %1158 = vadd.xlane.f32.xlu2 %v1157_v58  ;;  %v1166_v20 = vsel %vm1054_vm3, %v2767_v6, 0.0 }
 0x298   : > { %2210 = vpow2.f32 %v1141_v1  ;;  %v2175_v1 = vunpack.i.h.bf16 %v2645_v62  ;;  %v2180_v62 = vunpack.i.h.bf16 %v2648_v29 }
 0x299   : > { %v1087_v14 = vpop.xlane.xlu1 %1086  ;;  %v1084_v3 = vpop.xlane.xlu2 %1083  ;;  %2212 = vpow2.f32 %v1131_v0  ;;  %v2184_v0 = vunpack.i.l.bf16 %v2737_v28 }
 0x29a   : > { %v1112_v31 = vsub.f32 %v2707_v8, %v1084_v3  ;;  %2214 = vpow2.f32 %v1135_v23 }
 0x29b   : > { %v1099_v30 = vpop.xlane.xlu0 %1098 }
 0x29c   : > { %v2769_v63 = vpop.eup %2208  ;;  %v1117_v38 = vsub.f32 %v2710_v10, %v1099_v30  ;;  %v1113_v10 = vsub.f32 %v2713_v11, %v1087_v14 }
 0x29d   : > { %v1172_v17 = vsel %vm1054_vm3, %v2769_v63, 0.0 }
 0x29e   : > { %1173 = vadd.xlane.f32.xlu1 %v1172_v17  ;;  %v2776_v27 = vpop.eup %2210  ;;  %v1139_v53 = vmul.f32 1.442695, %v1113_v10 }
 0x29f   : > { %1167 = vadd.xlane.f32.xlu2 %v1166_v20  ;;  %v2780_v49 = vpop.eup %2212  ;;  %v1184_v24 = vsel %vm1054_vm3, %v2776_v27, 0.0 }
 0x2a0   : > { %v1169_v43 = vsel %vm1054_vm3, %v2780_v49, 0.0  ;;  %v2788_v36 = vpop.eup %2214 }
 0x2a1   : > { %v1096_v25 = vpop.xlane.xlu1 %1095  ;;  %v1093_v26 = vpop.xlane.xlu2 %1092  ;;  %v1175_v47 = vsel %vm1054_vm3, %v2788_v36, 0.0 }
 0x2a2   : > { %v1116_v32 = vsub.f32 %v2725_v15, %v1096_v25  ;;  %v1115_v34 = vsub.f32 %v2722_v13, %v1093_v26  ;;  %v1137_v13 = vmul.f32 1.442695, %v1112_v31  ;;  %v1147_v15 = vmul.f32 1.442695, %v1117_v38 }
 0x2a4   : > { %v1145_v35 = vmul.f32 1.442695, %v1116_v32  ;;  %v1143_v37 = vmul.f32 1.442695, %v1115_v34 }
 0x2a6   : > { %2216 = vpow2.f32 %v1145_v35  ;;  %1185 = vadd.xlane.f32.xlu1 %v1184_v24 }
 0x2a7   : > { %2218 = vpow2.f32 %v1143_v37  ;;  %1170 = vadd.xlane.f32.xlu2 %v1169_v43 }
 0x2a8   : > { %2220 = vpow2.f32 %v1137_v13 }
 0x2a9   : > { %2222 = vpow2.f32 %v1147_v15  ;;  %v1102_v54 = vpop.xlane.xlu2 %1101 }
 0x2aa   : > { %2224 = vpow2.f32 %v1139_v53  ;;  %v1118_v11 = vsub.f32 %v2732_v22, %v1102_v54  ;;  %v2186_v22 = vpack.i.bf16 %v2566_v55, %v2541_v44 }
 0x2ac   : > { %v2790_v8 = vpop.eup %2216  ;;  %v1149_v2 = vmul.f32 1.442695, %v1118_v11 }
 0x2ad   : > { %v2792_v45 = vpop.eup %2218  ;;  %v1190_v21 = vsel %vm1054_vm3, %v2790_v8, 0.0 }
 0x2ae   : > { %1191 = vadd.xlane.f32.xlu1 %v1190_v21  ;;  %v1187_v18 = vsel %vm1054_vm3, %v2792_v45, 0.0  ;;  %v2801_v42 = vpop.eup %2220  ;;  %2226 = vpow2.f32 %v1149_v2 }
 0x2af   : > { %1176 = vadd.xlane.f32.xlu2 %v1175_v47  ;;  %1188 = vadd.xlane.f32.xlu0 %v1187_v18  ;;  %v2803_v56 = vpop.eup %2222  ;;  %v1178_v60 = vsel %vm1054_vm3, %v2801_v42, 0.0 }
 0x2b0   : > { %v1193_v16 = vsel %vm1054_vm3, %v2803_v56, 0.0  ;;  %v2810_v51 = vpop.eup %2224 }
 0x2b1   : > { %v1181_v4 = vsel %vm1054_vm3, %v2810_v51, 0.0 }
 0x2b4   : > { %v2814_v5 = vpop.eup %2226 }
 0x2b5   : > { %v1196_v7 = vsel %vm1054_vm3, %v2814_v5, 0.0 }
 0x2b7   : > { %1179 = vadd.xlane.f32.xlu2 %v1178_v60  ;;  %1194 = vadd.xlane.f32.xlu0 %v1193_v16 }
 0x2bf   : > { %1182 = vadd.xlane.f32.xlu2 %v1181_v4 }
 0x2c7   : > { %1197 = vadd.xlane.f32.xlu2 %v1196_v7  ;;  %2187 = vrot.lane.b32.xlu1 %v2186_v22, %s2287_s9 }
 0x2cb   : > { %2192 = vrot.lane.b32.xlu0 %v2191_v41, %s2287_s9 }
 0x2cf   : > { %1621 = vrot.lane.b32.xlu1 %v2581_v61, %s2287_s9 }
 0x2d7   : > { %1595 = vrot.lane.b32.xlu1 %v2573_v57, %s2287_s9 }
 0x2f3   : > { %v1153_v12 = vpop.xlane.xlu1 %1152 }
 0x2f4   : > { %2228 = vrcp.f32 %v1153_v12 }
 0x2fa   : > { %v2229_v44 = vpop.eup %2228 }
 0x2fb   : > { %v1215_v55 = vmul.f32 %v2229_v44, %v2740_v33  ;;  %v1162_v58 = vpop.xlane.xlu0 %1161 }
 0x2fc   : > { %2230 = vrcp.f32 %v1162_v58 }
 0x2fd   : > { %2104 = vmatmul.msk.f32.vlgmr.msra.gmra.mxu2 %vm1054_vm3, %v1215_v55 }
 0x2fe   : > { %1408 = vmatpush.msra.mxu2 %v2175_v1 }
 0x301   : > { %v1156_v50 = vpop.xlane.xlu2 %1155 }
 0x302   : > { %v2231_v19 = vpop.eup %2230  ;;  %2232 = vrcp.f32 %v1156_v50 }
 0x303   : > { %v1218_v61 = vmul.f32 %v2231_v19, %v2745_v39 }
 0x305   : > { %2107 = vmatmul.msk.f32.vlgmr.msrb.gmra.mxu2 %vm1054_vm3, %v1218_v61 }
 0x306   : > { %1486 = vmatpush.msrb.mxu2 %v2184_v0 }
 0x308   : > { %v2233_v57 = vpop.eup %2232 }
 0x309   : > { %v1216_v33 = vmul.f32 %v2233_v57, %v2751_v52  ;;  %v1165_v14 = vpop.xlane.xlu0 %1164  ;;  %v2185_v52 = vunpack.i.h.bf16 %v2737_v28 }
 0x30a   : > { %2234 = vrcp.f32 %v1165_v14  ;;  %v1159_v3 = vpop.xlane.xlu2 %1158 }
 0x30b   : > { %2236 = vrcp.f32 %v1159_v3  ;;  %2105 = vmatmul.msk.f32.vlgmr.msra.gmra.mxu3 %vm1054_vm3, %v1216_v33 }
 0x30c   : > { %1434 = vmatpush.msra.mxu3 %v2180_v62 }
 0x310   : > { %v2235_v59 = vpop.eup %2234 }
 0x311   : > { %v2237_v17 = vpop.eup %2236  ;;  %v1219_v39 = vmul.f32 %v2235_v59, %v2757_v48  ;;  %v1174_v20 = vpop.xlane.xlu1 %1173 }
 0x312   : > { %v1217_v23 = vmul.f32 %v2237_v17, %v2760_v9  ;;  %2238 = vrcp.f32 %v1174_v20  ;;  %v1168_v25 = vpop.xlane.xlu2 %1167 }
 0x313   : > { %2240 = vrcp.f32 %v1168_v25  ;;  %2108 = vmatmul.msk.f32.vlgmr.msrb.gmra.mxu3 %vm1054_vm3, %v1219_v39 }
 0x314   : > { %2106 = vmatmul.msk.f32.vlgmr.msrb.gmra.mxu1 %vm1054_vm3, %v1217_v23 }
 0x315   : > { %1460 = vmatpush.msrb.mxu1 %v2185_v52 }
 0x318   : > { %v2239_v29 = vpop.eup %2238 }
 0x319   : > { %v2241_v26 = vpop.eup %2240  ;;  %v1222_v30 = vmul.f32 %v2239_v29, %v2769_v63  ;;  %v1186_v31 = vpop.xlane.xlu1 %1185 }
 0x31a   : > { %v1220_v32 = vmul.f32 %v2241_v26, %v2767_v6  ;;  %v1171_v48 = vpop.xlane.xlu2 %1170 }
 0x31b   : > { %2242 = vrcp.f32 %v1171_v48  ;;  %2111 = vmatmul.msk.f32.vlgmr.msra.gmra.mxu3 %vm1054_vm3, %v1222_v30 }
 0x31c   : > { %2109 = vmatmul.msk.f32.vlgmr.msra.gmra.mxu1 %vm1054_vm3, %v1220_v32 }
 0x321   : > { %v2243_v9 = vpop.eup %2242  ;;  %v1192_v6 = vpop.xlane.xlu1 %1191 }
 0x322   : > { %v1221_v28 = vmul.f32 %v2243_v9, %v2780_v49  ;;  %v1177_v34 = vpop.xlane.xlu2 %1176  ;;  %v1189_v38 = vpop.xlane.xlu0 %1188 }
 0x323   : > { %2244 = vrcp.f32 %v1177_v34 }
 0x324   : > { %2110 = vmatmul.msk.f32.vlgmr.msra.gmra.mxu2 %vm1054_vm3, %v1221_v28 }
 0x329   : > { %v2245_v35 = vpop.eup %2244 }
 0x32a   : > { %v1180_v37 = vpop.xlane.xlu2 %1179  ;;  %v1223_v63 = vmul.f32 %v2245_v35, %v2788_v36  ;;  %v1195_v49 = vpop.xlane.xlu0 %1194 }
 0x32b   : > { %2246 = vrcp.f32 %v1180_v37 }
 0x32c   : > { %2112 = vmatmul.msk.f32.vlgmr.msrb.gmra.mxu1 %vm1054_vm3, %v1223_v63  ;;  %2248 = vrcp.f32 %v1189_v38 }
 0x331   : > { %v2247_v24 = vpop.eup %2246 }
 0x332   : > { %v1183_v43 = vpop.xlane.xlu2 %1182  ;;  %v1224_v13 = vmul.f32 %v2247_v24, %v2801_v42  ;;  %v2249_v15 = vpop.eup %2248 }
 0x333   : > { %2250 = vrcp.f32 %v1183_v43  ;;  %v1227_v53 = vmul.f32 %v2249_v15, %v2792_v45 }
 0x334   : > { %2113 = vmatmul.msk.f32.vlgmr.msrb.gmra.mxu2 %vm1054_vm3, %v1224_v13  ;;  %2252 = vrcp.f32 %v1186_v31 }
 0x335   : > { %2254 = vrcp.f32 %v1192_v6 }
 0x339   : > { %v2251_v10 = vpop.eup %2250  ;;  %v2188_v21 = vpop.permute.xlu1 %2187 }
 0x33a   : > { %v2190_v47 = vunpack.i.h.bf16 %v2188_v21  ;;  %v2189_v36 = vunpack.i.l.bf16 %v2188_v21  ;;  %v1198_v18 = vpop.xlane.xlu2 %1197  ;;  %v1225_v54 = vmul.f32 %v2251_v10, %v2810_v51  ;;  %v2253_v11 = vpop.eup %2252 }
 0x33b   : > { %2256 = vrcp.f32 %v1198_v18  ;;  %v1226_v2 = vmul.f32 %v2253_v11, %v2776_v27  ;;  %v2255_v4 = vpop.eup %2254 }
 0x33c   : > { %1512 = vmatpush.msrb.mxu3 %v2189_v36  ;;  %1564 = vmatpush.msra.mxu2 %v2190_v47  ;;  %2258 = vrcp.f32 %v1195_v49  ;;  %v1228_v22 = vmul.f32 %v2255_v4, %v2790_v8 }
 0x33d   : > { %v2193_v42 = vpop.permute.xlu0 %2192  ;;  %2114 = vmatmul.msk.f32.vlgmr.msrb.gmra.mxu3 %vm1054_vm3, %v1225_v54  ;;  %2116 = vmatmul.msk.f32.vlgmr.msra.gmra.mxu2 %vm1054_vm3, %v1227_v53 }
 0x33e   : > { %v2195_v60 = vunpack.i.h.bf16 %v2193_v42  ;;  %v2194_v16 = vunpack.i.l.bf16 %v2193_v42 }
 0x340   : > { %1538 = vmatpush.msra.mxu1 %v2194_v16  ;;  %1590 = vmatpush.msra.mxu3 %v2195_v60 }
 0x341   : > { %v2257_v45 = vpop.eup %2256  ;;  %2115 = vmatmul.msk.f32.vlgmr.msra.gmra.mxu1 %vm1054_vm3, %v1226_v2  ;;  %v1622_v51 = vpop.permute.xlu1 %1621 }
 0x342   : > { %1642 = vmatpush.msrb.mxu2 %v1622_v51  ;;  %v1230_v7 = vmul.f32 %v2257_v45, %v2814_v5  ;;  %v2259_v41 = vpop.eup %2258 }
 0x343   : > { %v1229_v27 = vmul.f32 %v2259_v41, %v2803_v56 }
 0x345   : > { %2117 = vmatmul.msk.f32.vlgmr.msra.gmra.mxu3 %vm1054_vm3, %v1228_v22  ;;  %2119 = vmatmul.msk.f32.vlgmr.msrb.gmra.mxu2 %vm1054_vm3, %v1230_v7 }
 0x349   : > { %v1596_v12 = vpop.permute.xlu1 %1595 }
 0x34a   : > { %1616 = vmatpush.msrb.mxu1 %v1596_v12 }
 0x34b   : > { %2118 = vmatmul.msk.f32.vlgmr.msrb.gmra.mxu1 %vm1054_vm3, %v1229_v27 }
 0x380   : > { %v1254_v44 = vpop.f32.mrf.mxu2 }
 0x381   : > { %v1649_v0 = vrot.slane %v1254_v44, 4 }
 0x388   : > { %v1332_v19 = vpop.f32.mrf.mxu2 }
 0x389   : > { %v1659_v61 = vrot.slane %v1332_v19, 4 }
 0x38e   : > { %v1280_v55 = vpop.f32.mrf.mxu3 }
 0x38f   : > { %v1661_v1 = vrot.slane %v1280_v55, 4  ;;  %v1660_v33 = vsel %vm396_vm1, %v1659_v61, %v1280_v55 }
 0x390   : > { %v1666_v17 = vperm.slane %v1660_v33, %v2413_v46 }
 0x391   : > { %v1306_v58 = vpop.f32.mrf.mxu1  ;;  %v1662_v5 = vsel %vm396_vm1, %v1332_v19, %v1661_v1 }
 0x392   : > { %v1647_v8 = vrot.slane %v1306_v58, 4  ;;  %v1670_v56 = vperm.slane %v1662_v5, %v2413_v46  ;;  %v1650_v62 = vsel %vm396_vm1, %v1306_v58, %v1649_v0  ;;  %v1695_v26 = vrot.slane %v1666_v17, 4 }
 0x393   : > { %v1658_v25 = vperm.slane %v1650_v62, %v2413_v46 }
 0x394   : > { %v1648_v57 = vsel %vm396_vm1, %v1647_v8, %v1254_v44  ;;  %v1707_v23 = vrot.slane %v1670_v56, 4 }
 0x395   : > { %v1654_v59 = vperm.slane %v1648_v57, %v2413_v46  ;;  %v1709_v48 = vrot.slane %v1658_v25, 4 }
 0x396   : > { %v1358_v50 = vpop.f32.mrf.mxu3  ;;  %v1708_v32 = vsel %vm396_vm1, %v1707_v23, %v1658_v25 }
 0x397   : > { %v1697_v29 = vrot.slane %v1654_v59, 4  ;;  %v1696_v28 = vsel %vm396_vm1, %v1695_v26, %v1654_v59  ;;  %v1673_v34 = vrot.slane %v1358_v50, 4  ;;  %v1714_v38 = vperm.slane %v1708_v32, %v2458_v40 }
 0x398   : > { %v1702_v24 = vperm.slane %v1696_v28, %v2458_v40  ;;  %v1710_v43 = vsel %vm396_vm1, %v1670_v56, %v1709_v48 }
 0x399   : > { %v1384_v14 = vpop.f32.mrf.mxu1  ;;  %v1698_v31 = vsel %vm396_vm1, %v1666_v17, %v1697_v29  ;;  %v1718_v53 = vperm.slane %v1710_v43, %v2458_v40  ;;  %v1753_v54 = vrot.slane %v1714_v38, 4 }
 0x39a   : > { %v1685_v39 = vrot.slane %v1384_v14, 4  ;;  %v1706_v15 = vperm.slane %v1698_v31, %v2458_v40  ;;  %v1745_v42 = vrot.slane %v1702_v24, 4 }
 0x39b   : > { %v1757_v1 = vrot.slane %v1718_v53, 4 }
 0x39c   : > { %v1749_v7 = vrot.slane %v1706_v15, 4 }
 0x39e   : > { %v1436_v3 = vpop.f32.mrf.mxu3 }
 0x39f   : > { %v1683_v20 = vrot.slane %v1436_v3, 4  ;;  %v1686_v52 = vsel %vm396_vm1, %v1436_v3, %v1685_v39 }
 0x3a0   : > { %v1694_v9 = vperm.slane %v1686_v52, %v2413_v46 }
 0x3a1   : > { %v1684_v30 = vsel %vm396_vm1, %v1683_v20, %v1384_v14 }
 0x3a2   : > { %v1690_v35 = vperm.slane %v1684_v30, %v2413_v46  ;;  %v1731_v13 = vrot.slane %v1694_v9, 4 }
 0x3a4   : > { %v1719_v21 = vrot.slane %v1690_v35, 4 }
 0x3a7   : > { %v1410_v37 = vpop.f32.mrf.mxu2 }
 0x3a8   : > { %v1671_v63 = vrot.slane %v1410_v37, 4  ;;  %v1674_v6 = vsel %vm396_vm1, %v1410_v37, %v1673_v34 }
 0x3a9   : > { %v1682_v49 = vperm.slane %v1674_v6, %v2413_v46  ;;  %v1462_v57 = vpop.f32.mrf.mxu1 }
 0x3aa   : > { %v1672_v10 = vsel %vm396_vm1, %v1671_v63, %v1358_v50  ;;  %v1761_v62 = vrot.slane %v1462_v57, 4 }
 0x3ab   : > { %v1678_v47 = vperm.slane %v1672_v10, %v2413_v46  ;;  %v1732_v36 = vsel %vm396_vm1, %v1731_v13, %v1682_v49  ;;  %v1733_v18 = vrot.slane %v1682_v49, 4 }
 0x3ac   : > { %v1738_v11 = vperm.slane %v1732_v36, %v2458_v40 }
 0x3ad   : > { %v1720_v60 = vsel %vm396_vm1, %v1719_v21, %v1678_v47  ;;  %v1721_v16 = vrot.slane %v1678_v47, 4  ;;  %v1734_v2 = vsel %vm396_vm1, %v1694_v9, %v1733_v18 }
 0x3ae   : > { %v1726_v4 = vperm.slane %v1720_v60, %v2458_v40  ;;  %v1742_v45 = vperm.slane %v1734_v2, %v2458_v40  ;;  %v1751_v51 = vrot.slane %v1738_v11, 4  ;;  %v1754_v22 = vsel %vm396_vm1, %v1738_v11, %v1753_v54 }
 0x3af   : > { %v1722_v41 = vsel %vm396_vm1, %v1690_v35, %v1721_v16  ;;  %1881 = vst.msk [vmem:[%s2897_s12 + $0x50] sm:$0xff] %vm624_vm2, %v1754_v22 }
 0x3b0   : > { %v1730_v27 = vperm.slane %v1722_v41, %v2458_v40  ;;  %v1743_v12 = vrot.slane %v1726_v4, 4  ;;  %v1746_v44 = vsel %vm396_vm1, %v1726_v4, %v1745_v42  ;;  %v1752_v55 = vsel %vm396_vm1, %v1751_v51, %v1714_v38 }
 0x3b1   : > { %v1755_v58 = vrot.slane %v1742_v45, 4  ;;  %1873 = vst.msk [vmem:[%s2897_s12 + $0x10] sm:$0xff] %vm624_vm2, %v1746_v44  ;;  %v1758_v0 = vsel %vm396_vm1, %v1742_v45, %v1757_v1 }
 0x3b2   : > { %v1744_v50 = vsel %vm396_vm1, %v1743_v12, %v1702_v24  ;;  %v1747_v19 = vrot.slane %v1730_v27, 4  ;;  %v1750_v8 = vsel %vm396_vm1, %v1730_v27, %v1749_v7  ;;  %1879 = vst.msk [vmem:[%s2897_s12 + $0x40] sm:$0xff] %vm624_vm2, %v1752_v55 }
 0x3b3   : > { %v1756_v5 = vsel %vm396_vm1, %v1755_v58, %v1718_v53  ;;  %1871 = vst.msk [vmem:[%s2897_s12] sm:$0xff] %vm624_vm2, %v1744_v50 }
 0x3b4   : > { %v1748_v61 = vsel %vm396_vm1, %v1747_v19, %v1706_v15  ;;  %1877 = vst.msk [vmem:[%s2897_s12 + $0x30] sm:$0xff] %vm624_vm2, %v1750_v8 }
 0x3b5   : > { %1875 = vst.msk [vmem:[%s2897_s12 + $0x20] sm:$0xff] %vm624_vm2, %v1748_v61 }
 0x3b6   : > { %1883 = vst.msk [vmem:[%s2897_s12 + $0x60] sm:$0xff] %vm624_vm2, %v1756_v5 }
 0x3b7   : > { %1885 = vst.msk [vmem:[%s2897_s12 + $0x70] sm:$0xff] %vm624_vm2, %v1758_v0  ;;  %v1488_v33 = vpop.f32.mrf.mxu2 }
 0x3b8   : > { %v1773_v56 = vrot.slane %v1488_v33, 4 }
 0x3be   : > { %v1540_v14 = vpop.f32.mrf.mxu1 }
 0x3bf   : > { %v1771_v3 = vrot.slane %v1540_v14, 4  ;;  %v1774_v59 = vsel %vm396_vm1, %v1540_v14, %v1773_v56 }
 0x3c0   : > { %v1782_v17 = vperm.slane %v1774_v59, %v2413_v46  ;;  %v1514_v39 = vpop.f32.mrf.mxu3  ;;  %v1566_v20 = vpop.f32.mrf.mxu2 }
 0x3c1   : > { %v1772_v23 = vsel %vm396_vm1, %v1771_v3, %v1488_v33  ;;  %v1759_v25 = vrot.slane %v1514_v39, 4  ;;  %v1762_v52 = vsel %vm396_vm1, %v1514_v39, %v1761_v62  ;;  %v1785_v35 = vrot.slane %v1566_v20, 4  ;;  %v1955_v39 = vld [vmem:[%s2897_s12] sm:$0xff] (%p2338_p5) }
 0x3c2   : > { %v1778_v29 = vperm.slane %v1772_v23, %v2413_v46  ;;  %v1770_v26 = vperm.slane %v1762_v52, %v2413_v46  ;;  %v1819_v32 = vrot.slane %v1782_v17, 4  ;;  %v1959_v23 = vld [vmem:[%s2897_s12 + $0x10] sm:$0xff] (%p2338_p5)  ;;  %1956 = vst [vmem:[%s1896_s20] sm:$0xff] (%p2338_p5), %v1955_v39  ;;  %v1963_v52 = vld [vmem:[%s2897_s12 + $0x20] sm:$0xff] (%p2338_p5) }
 0x3c3   : > { %v1760_v30 = vsel %vm396_vm1, %v1759_v25, %v1462_v57  ;;  %1960 = vst [vmem:[%s1896_s20 + $0x40] sm:$0xff] (%p2338_p5), %v1959_v23 }
 0x3c4   : > { %v1766_v48 = vperm.slane %v1760_v30, %v2413_v46  ;;  %v1821_v9 = vrot.slane %v1770_v26, 4  ;;  %v1807_v28 = vrot.slane %v1778_v29, 4  ;;  %v1820_v31 = vsel %vm396_vm1, %v1819_v32, %v1770_v26  ;;  %v1967_v26 = vld [vmem:[%s2897_s12 + $0x30] sm:$0xff] (%p2338_p5)  ;;  %1964 = vst [vmem:[%s1896_s20 + $0x80] sm:$0xff] (%p2338_p5), %v1963_v52  ;;  %v1971_v32 = vld [vmem:[%s2897_s12 + $0x40] sm:$0xff] (%p2338_p5) }
 0x3c5   : > { %v1826_v21 = vperm.slane %v1820_v31, %v2458_v40  ;;  %1968 = vst [vmem:[%s1896_s20 + $0xc0] sm:$0xff] (%p2338_p5), %v1967_v26 }
 0x3c6   : > { %v1809_v34 = vrot.slane %v1766_v48, 4  ;;  %v1822_v63 = vsel %vm396_vm1, %v1782_v17, %v1821_v9  ;;  %v1808_v43 = vsel %vm396_vm1, %v1807_v28, %v1766_v48  ;;  %v1975_v9 = vld [vmem:[%s2897_s12 + $0x50] sm:$0xff] (%p2338_p5)  ;;  %1972 = vst [vmem:[%s1896_s20 + $0x100] sm:$0xff] (%p2338_p5), %v1971_v32 }
 0x3c7   : > { %v1830_v18 = vperm.slane %v1822_v63, %v2458_v40  ;;  %v1814_v42 = vperm.slane %v1808_v43, %v2458_v40  ;;  %v1865_v41 = vrot.slane %v1826_v21, 4  ;;  %1976 = vst [vmem:[%s1896_s20 + $0x140] sm:$0xff] (%p2338_p5), %v1975_v9 }
 0x3c8   : > { %v1592_v37 = vpop.f32.mrf.mxu3  ;;  %v1618_v38 = vpop.f32.mrf.mxu1  ;;  %v1810_v10 = vsel %vm396_vm1, %v1778_v29, %v1809_v34  ;;  %v1979_v34 = vld [vmem:[%s2897_s12 + $0x60] sm:$0xff] (%p2338_p5) }
 0x3c9   : > { %v1797_v6 = vrot.slane %v1592_v37, 4  ;;  %v1644_v24 = vpop.f32.mrf.mxu2  ;;  %v1783_v13 = vrot.slane %v1618_v38, 4  ;;  %v1786_v49 = vsel %vm396_vm1, %v1618_v38, %v1785_v35  ;;  %v1818_v4 = vperm.slane %v1810_v10, %v2458_v40  ;;  %v1983_v35 = vld [vmem:[%s2897_s12 + $0x70] sm:$0xff] (%p2338_p5)  ;;  %1980 = vst [vmem:[%s1896_s20 + $0x180] sm:$0xff] (%p2338_p5), %v1979_v34 }
 0x3ca   : > { %v1795_v15 = vrot.slane %v1644_v24, 4  ;;  %v1794_v47 = vperm.slane %v1786_v49, %v2413_v46  ;;  %v1869_v27 = vrot.slane %v1830_v18, 4  ;;  %v1857_v55 = vrot.slane %v1814_v42, 4  ;;  %1984 = vst [vmem:[%s1896_s20 + $0x1c0] sm:$0xff] (%p2338_p5), %v1983_v35 }
 0x3cb   : > { %v1798_v36 = vsel %vm396_vm1, %v1644_v24, %v1797_v6  ;;  %v1784_v53 = vsel %vm396_vm1, %v1783_v13, %v1566_v20  ;;  %v1861_v50 = vrot.slane %v1818_v4, 4 }
 0x3cc   : > { %v1796_v54 = vsel %vm396_vm1, %v1795_v15, %v1592_v37  ;;  %v1806_v11 = vperm.slane %v1798_v36, %v2413_v46  ;;  %v1790_v60 = vperm.slane %v1784_v53, %v2413_v46  ;;  %v1845_v16 = vrot.slane %v1794_v47, 4 }
 0x3cd   : > { %v1802_v2 = vperm.slane %v1796_v54, %v2413_v46 }
 0x3ce   : > { %v1843_v45 = vrot.slane %v1806_v11, 4  ;;  %v1833_v51 = vrot.slane %v1790_v60, 4  ;;  %v1846_v7 = vsel %vm396_vm1, %v1806_v11, %v1845_v16 }
 0x3cf   : > { %v1831_v22 = vrot.slane %v1802_v2, 4  ;;  %v1854_v44 = vperm.slane %v1846_v7, %v2458_v40 }
 0x3d0   : > { %v1844_v12 = vsel %vm396_vm1, %v1843_v45, %v1794_v47  ;;  %v1834_v46 = vsel %vm396_vm1, %v1802_v2, %v1833_v51 }
 0x3d1   : > { %v1832_v58 = vsel %vm396_vm1, %v1831_v22, %v1790_v60  ;;  %v1850_v1 = vperm.slane %v1844_v12, %v2458_v40  ;;  %v1842_v8 = vperm.slane %v1834_v46, %v2458_v40  ;;  %v1870_v5 = vsel %vm396_vm1, %v1854_v44, %v1869_v27 }
 0x3d2   : > { %v1838_v19 = vperm.slane %v1832_v58, %v2458_v40  ;;  %v1867_v57 = vrot.slane %v1854_v44, 4  ;;  %1886 = vst.msk [vmem:[%s2897_s12 + $0x78] sm:$0xff] %vm624_vm2, %v1870_v5 }
 0x3d3   : > { %v1863_v61 = vrot.slane %v1850_v1, 4  ;;  %v1866_v0 = vsel %vm396_vm1, %v1850_v1, %v1865_v41  ;;  %v1859_v14 = vrot.slane %v1842_v8, 4  ;;  %v1862_v62 = vsel %vm396_vm1, %v1842_v8, %v1861_v50 }
 0x3d4   : > { %v1855_v33 = vrot.slane %v1838_v19, 4  ;;  %v1858_v56 = vsel %vm396_vm1, %v1838_v19, %v1857_v55  ;;  %1882 = vst.msk [vmem:[%s2897_s12 + $0x58] sm:$0xff] %vm624_vm2, %v1866_v0  ;;  %v1868_v17 = vsel %vm396_vm1, %v1867_v57, %v1830_v18 }
 0x3d5   : > { %1874 = vst.msk [vmem:[%s2897_s12 + $0x18] sm:$0xff] %vm624_vm2, %v1858_v56  ;;  %v1860_v3 = vsel %vm396_vm1, %v1859_v14, %v1818_v4  ;;  %v1864_v59 = vsel %vm396_vm1, %v1863_v61, %v1826_v21 }
 0x3d6   : > { %v1856_v40 = vsel %vm396_vm1, %v1855_v33, %v1814_v42  ;;  %1878 = vst.msk [vmem:[%s2897_s12 + $0x38] sm:$0xff] %vm624_vm2, %v1862_v62  ;;  %1893 = sbr.rel (!%p2338_p5) target bundleno = 995 (0x3e3), region = 74 }
 0x3d7   : > { %1872 = vst.msk [vmem:[%s2897_s12 + $0x8] sm:$0xff] %vm624_vm2, %v1856_v40 }
 0x3d8   : > { %1876 = vst.msk [vmem:[%s2897_s12 + $0x28] sm:$0xff] %vm624_vm2, %v1860_v3 }
 0x3d9   : > { %1880 = vst.msk [vmem:[%s2897_s12 + $0x48] sm:$0xff] %vm624_vm2, %v1864_v59  ;;  %v1985_v37 = vld [vmem:[%s2897_s12 + $0x78] sm:$0xff] (%p2338_p5) }
 0x3da   : > { %1884 = vst.msk [vmem:[%s2897_s12 + $0x68] sm:$0xff] %vm624_vm2, %v1868_v17 }
 0x3db   : > { %v1977_v28 = vld [vmem:[%s2897_s12 + $0x58] sm:$0xff]  ;;  %1986 = vst [vmem:[%s1896_s20 + $0x1c8] sm:$0xff] %v1985_v37 }
 0x3dc   : > { %v1961_v25 = vld [vmem:[%s2897_s12 + $0x18] sm:$0xff]  ;;  %1978 = vst [vmem:[%s1896_s20 + $0x148] sm:$0xff] %v1977_v28 }
 0x3dd   : > { %1962 = vst [vmem:[%s1896_s20 + $0x48] sm:$0xff] %v1961_v25  ;;  %v1969_v30 = vld [vmem:[%s2897_s12 + $0x38] sm:$0xff] }
 0x3de   : > { %v1957_v20 = vld [vmem:[%s2897_s12 + $0x8] sm:$0xff]  ;;  %1970 = vst [vmem:[%s1896_s20 + $0xc8] sm:$0xff] %v1969_v30 }
 0x3df   : > { %1958 = vst [vmem:[%s1896_s20 + $0x8] sm:$0xff] %v1957_v20  ;;  %v1965_v29 = vld [vmem:[%s2897_s12 + $0x28] sm:$0xff] }
 0x3e0   : > { %1966 = vst [vmem:[%s1896_s20 + $0x88] sm:$0xff] %v1965_v29  ;;  %v1973_v48 = vld [vmem:[%s2897_s12 + $0x48] sm:$0xff] }
 0x3e1   : > { %1974 = vst [vmem:[%s1896_s20 + $0x108] sm:$0xff] %v1973_v48  ;;  %v1981_v31 = vld [vmem:[%s2897_s12 + $0x68] sm:$0xff] }
 0x3e2   : > { %1982 = vst [vmem:[%s1896_s20 + $0x188] sm:$0xff] %v1981_v31 }
 0x3e3 PF: > { %p10_p10 = scmp.ge.s32.totalorder %s2325_s16, 6   ;;  %s3017_s12 = smov %s2278_s13 }
 0x3e4   : > { %s3018_s13 = smov %s2336_s19  ;;  %s3019_s14 = smov %s2325_s16 }
 0x3e5   :  { %12 = sbr.rel (!%p10_p10) target bundleno = 2 (0x2), region = 143 }

</bundles_post_ra>
